<compile_context>
chip_gen: v7x
topology: tpu7x:2x2x1
jax: 0.10.0
libtpu: 0.0.40
codegen_flags: <defaults>
</compile_context>

<pallas_src>
import math
from functools import partial

import numpy as np
import jax
import jax.numpy as jnp
from jax.experimental import pallas as pl
from jax.experimental.pallas import tpu as pltpu

# ---------------- config (small shapes consistent with WorldDetect) ----------
NC = 8                         # number of classes == number of text queries
EMBED = 32                     # image/text embedding dim
REG_MAX = 16
CH = (16, 32)                  # per-level input channels
SPATIAL = ((8, 8), (4, 4))     # per-level (H, W)
STRIDES = (8.0, 16.0)          # Detect.stride (normally set by the parent model)
BATCH = 2
NL = len(CH)
NO = NC + 4 * REG_MAX                      # 72
C2 = max(16, CH[0] // 4, 4 * REG_MAX)      # 64  (box branch width)
C3 = max(CH[0], min(NC, 100))              # 16  (embedding branch width)
BN_EPS = 1e-3                              # ultralytics Conv -> BatchNorm2d(eps=1e-3)

# common padded geometry shared by every level (level-1's 4x4 grid is embedded in
# the same 10x10 zero frame so the kernel is identical for all levels)
HP = max(h for h, _ in SPATIAL) + 2        # 10
WP = max(w for _, w in SPATIAL) + 2        # 10
PB = ((HP * WP + 127) // 128) * 128        # per-batch lane block, 128-aligned
CIN_MAX = max(CH)                          # 32 (level-0 channels zero-padded up)
DEC_ROWS = ((4 + NC + 7) // 8) * 8         # 16 (decoded rows padded to sublane tile)


# --------------------------- Pallas kernel -----------------------------------
def _world_detect_kernel(x_ref, geo_ref, w1_ref, w2_ref, w3_ref, b_ref, text_ref,
                         raw_ref, dec_ref, *, wp, pb, batch, nc, reg_max,
                         c2, c3, roll_sign):
    """One detection level: cv2 + cv3 + cv4(ContrastiveHead) + decode, fully fused.

    raw_ref rows [0, 4*reg_max) = box logits, rows [4*reg_max, NO) = cls logits.
    dec_ref rows 0..3 = dist2bbox(xywh)*stride, rows 4..11 = sigmoid(cls), rest 0.
    Column layout: batch-major, each batch a 128-lane block holding the zero-padded
    10x10 spatial grid (row-major) in its first 100 lanes.
    """
    n = raw_ref.shape[1]                 # B * 128
    nb = 4 * reg_max                     # 64 box channels
    cmid = c2 + c3                       # 80 fused mid channels

    def sigmoid(v):
        return 1.0 / (1.0 + jnp.exp(-v))

    def conv3x3_silu(src, w_ref, bias):
        """3x3 conv over the flattened padded grid: 9 accumulating MXU matmuls on
        XLU-rotated full-width operands (no unaligned slices, no im2col scratch)."""
        acc = None
        for t in range(9):
            dy, dx = t // 3 - 1, t % 3 - 1
            s = dy * wp + dx                       # source-column offset of this tap
            win = src if s == 0 else pltpu.roll(src, (-roll_sign * s) % n, axis=1)
            part = jnp.dot(w_ref[t], win, preferred_element_type=jnp.float32)
            acc = part if acc is None else acc + part
        y = acc + bias
        return y * sigmoid(y)                      # SiLU

    mask = geo_ref[3:4, :]               # 1.0 on interior (non-padding) columns
    b1 = b_ref[0:cmid, 0:1]
    b2 = b_ref[0:cmid, 1:2]
    b3 = b_ref[:, 2:3]
    cb = b_ref[0:1, 3:4]                 # ContrastiveHead bias (scalar)

    x = x_ref[...]                                           # (Cin_max, n)
    y1 = conv3x3_silu(x, w1_ref, b1) * mask                  # fused cv2|cv3 conv1
    y2 = conv3x3_silu(y1, w2_ref, b2) * mask                 # fused (block-diag) conv2
    z = jnp.dot(w3_ref[...], y2, preferred_element_type=jnp.float32) + b3   # (96, n)

    box = z[0:nb, :]                                         # cv2 1x1 output (64, n)
    raw_ref[0:nb, :] = box

    # -------- ContrastiveHead: per-column L2 norm + per-batch text matmul -----
    emb = z[nb:, :]                                          # (EMBED, n)
    norm = jnp.sqrt(jnp.sum(emb * emb, axis=0, keepdims=True))
    embn = emb / jnp.maximum(norm, 1e-12)                    # F.normalize(dim=1)
    for b in range(batch):                                   # 128-aligned lane slices
        lo = b * pb
        t_b = text_ref[b * nc:(b + 1) * nc, :]               # pre-normalized & scaled
        cls_b = jnp.dot(t_b, embn[:, lo:lo + pb],
                        preferred_element_type=jnp.float32) + cb
        raw_ref[nb:, lo:lo + pb] = cls_b
        dec_ref[4:4 + nc, lo:lo + pb] = sigmoid(cls_b)

    # -------- decode: DFL expectation + dist2bbox(xywh) * stride --------------
    bins = jax.lax.broadcasted_iota(jnp.float32, (reg_max, 1), 0)
    d = []
    for side in range(4):
        logits = box[side * reg_max:(side + 1) * reg_max, :]
        m = jnp.max(logits, axis=0, keepdims=True)
        e = jnp.exp(logits - m)
        d.append(jnp.sum(e * bins, axis=0, keepdims=True)
                 / jnp.sum(e, axis=0, keepdims=True))
    lx, ly, rx, ry = d
    ax, ay, strd = geo_ref[0:1, :], geo_ref[1:2, :], geo_ref[2:3, :]
    x1, yy1 = ax - lx, ay - ly
    x2, yy2 = ax + rx, ay + ry
    dec_ref[0:1, :] = (x1 + x2) * 0.5 * strd
    dec_ref[1:2, :] = (yy1 + yy2) * 0.5 * strd
    dec_ref[2:3, :] = (x2 - x1) * strd
    dec_ref[3:4, :] = (yy2 - yy1) * strd
    if dec_ref.shape[0] > 4 + nc:                            # zero the pad rows
        dec_ref[4 + nc:, :] = jnp.zeros((dec_ref.shape[0] - 4 - nc, n), jnp.float32)


def _probe_roll_sign():
    """One-time probe (outside the hot path) of pltpu.roll's rotation direction so
    the conv-tap lane shifts are independent of the lowering's rotate convention."""
    def k(x_ref, o_ref):
        o_ref[...] = pltpu.roll(x_ref[...], 1, axis=1)

    x = jax.lax.broadcasted_iota(jnp.float32, (8, 128), 1)
    out = pl.pallas_call(k, out_shape=jax.ShapeDtypeStruct((8, 128), jnp.float32))(x)
    first = float(jax.device_get(out)[0, 0])
    assert first in (127.0, 1.0)
    return 1 if first == 127.0 else -1      # +1 == jnp.roll semantics


# ------------------------- weight / layout packing ----------------------------
def _fold_conv_bn(p):
    """Fold Conv2d(k=3, bias=False) + BatchNorm2d(eval) into weight + bias."""
    scale = p["gamma"] / jnp.sqrt(p["var"] + BN_EPS)
    return p["w"] * scale[:, None, None, None], p["beta"] - p["mean"] * scale


def _taps_first(w):  # (Cout, Cin, 3, 3) -> (9, Cout, Cin), tap t = ky*3 + kx
    return jnp.transpose(w, (2, 3, 0, 1)).reshape(9, w.shape[0], w.shape[1])


def _pack_level_weights(p2, p3, p4):
    """Fuse cv2/cv3 into shared (conv1: concatenated, conv2/1x1: block-diagonal)
    weights plus one packed bias array per level."""
    cmid, cout = C2 + C3, 4 * REG_MAX + EMBED
    w1b, b1b = _fold_conv_bn(p2["c1"])
    w1e, b1e = _fold_conv_bn(p3["c1"])
    w1 = jnp.concatenate([w1b, w1e], axis=0)                      # (80, cin, 3, 3)
    w1 = jnp.pad(w1, ((0, 0), (0, CIN_MAX - w1.shape[1]), (0, 0), (0, 0)))
    w1 = _taps_first(w1)                                          # (9, 80, 32)

    w2b, b2b = _fold_conv_bn(p2["c2"])
    w2e, b2e = _fold_conv_bn(p3["c2"])
    w2 = jnp.zeros((cmid, cmid, 3, 3), jnp.float32)
    w2 = w2.at[:C2, :C2].set(w2b).at[C2:, C2:].set(w2e)
    w2 = _taps_first(w2)                                          # (9, 80, 80)

    w3 = jnp.zeros((cout, cmid), jnp.float32)
    w3 = w3.at[:4 * REG_MAX, :C2].set(p2["c3"]["w"].reshape(4 * REG_MAX, C2))
    w3 = w3.at[4 * REG_MAX:, C2:].set(p3["c3"]["w"].reshape(EMBED, C3))
    b3 = jnp.concatenate([p2["c3"]["b"], p3["c3"]["b"]])          # (96,)

    bias = jnp.stack([
        jnp.pad(jnp.concatenate([b1b, b1e]), (0, cout - cmid)),
        jnp.pad(jnp.concatenate([b2b, b2e]), (0, cout - cmid)),
        b3,
        jnp.full((cout,), jnp.asarray(p4["bias"], jnp.float32)),
    ], axis=1)                                                    # (96, 4)
    return w1, w2, w3, bias


def _level_geometry(h, w, stride, batch):
    """(8, batch*PB): rows = [anchor_x, anchor_y, stride, interior mask, 0...]."""
    g = np.zeros((8, HP, WP), np.float32)
    g[0, 1:1 + h, 1:1 + w] = np.arange(w, dtype=np.float32)[None, :] + 0.5
    g[1, 1:1 + h, 1:1 + w] = np.arange(h, dtype=np.float32)[:, None] + 0.5
    g[2, :, :] = stride
    g[3, 1:1 + h, 1:1 + w] = 1.0
    g = g.reshape(8, HP * WP)
    g = np.pad(g, ((0, 0), (0, PB - HP * WP)))
    return np.tile(g, (1, batch))


# ------------------------------- forward --------------------------------------
def world_detect_forward(xs, text, params, roll_sign=1):
    """Inference-mode WorldDetect.forward: returns (y, per-level raw outputs)."""
    batch = xs[0].shape[0]
    nlanes = batch * PB

    tn = text / jnp.maximum(
        jnp.sqrt(jnp.sum(text * text, axis=-1, keepdims=True)), 1e-12)

    x_in, geos, w1s, w2s, w3s, biases, texts = [], [], [], [], [], [], []
    for i, x in enumerate(xs):
        _, cin, h, w = x.shape
        xp = jnp.pad(x, ((0, 0), (0, CIN_MAX - cin), (1, HP - 1 - h), (1, WP - 1 - w)))
        xp = xp.reshape(batch, CIN_MAX, HP * WP)
        xp = jnp.pad(xp, ((0, 0), (0, 0), (0, PB - HP * WP)))
        x_in.append(jnp.transpose(xp, (1, 0, 2)).reshape(CIN_MAX, nlanes))

        w1, w2, w3, bias = _pack_level_weights(params["cv2"][i], params["cv3"][i],
                                               params["cv4"][i])
        w1s.append(w1); w2s.append(w2); w3s.append(w3); biases.append(bias)
        ls = jnp.exp(jnp.asarray(params["cv4"][i]["logit_scale"], jnp.float32))
        texts.append((tn * ls).reshape(batch * NC, EMBED))
        geos.append(_level_geometry(h, w, STRIDES[i], batch))

    kern = partial(_world_detect_kernel, wp=WP, pb=PB, batch=batch, nc=NC,
                   reg_max=REG_MAX, c2=C2, c3=C3, roll_sign=roll_sign)
    raw, dec = pl.pallas_call(
        kern,
        out_shape=(jax.ShapeDtypeStruct((NL, NO, nlanes), jnp.float32),
                   jax.ShapeDtypeStruct((NL, DEC_ROWS, nlanes), jnp.float32)),
        grid=(NL,),
        in_specs=[
            pl.BlockSpec((None, CIN_MAX, nlanes), lambda i: (i, 0, 0)),
            pl.BlockSpec((None, 8, nlanes), lambda i: (i, 0, 0)),
            pl.BlockSpec((None, 9, C2 + C3, CIN_MAX), lambda i: (i, 0, 0, 0)),
            pl.BlockSpec((None, 9, C2 + C3, C2 + C3), lambda i: (i, 0, 0, 0)),
            pl.BlockSpec((None, 4 * REG_MAX + EMBED, C2 + C3), lambda i: (i, 0, 0)),
            pl.BlockSpec((None, 4 * REG_MAX + EMBED, 4), lambda i: (i, 0, 0)),
            pl.BlockSpec((None, batch * NC, EMBED), lambda i: (i, 0, 0)),
        ],
        out_specs=(
            pl.BlockSpec((None, NO, nlanes), lambda i: (i, 0, 0)),
            pl.BlockSpec((None, DEC_ROWS, nlanes), lambda i: (i, 0, 0)),
        ),
        compiler_params=pltpu.CompilerParams(
            dimension_semantics=("parallel",)),      # level axis -> v7x 2nd TensorCore
    )(jnp.stack(x_in), jnp.stack(geos), jnp.stack(w1s), jnp.stack(w2s),
      jnp.stack(w3s), jnp.stack(biases), jnp.stack(texts))

    # un-fold: drop lane padding + halo, back to NCHW / (B, 4+NC, A)
    raw = raw.reshape(NL, NO, batch, PB)[..., :HP * WP].reshape(NL, NO, batch, HP, WP)
    dec = dec.reshape(NL, DEC_ROWS, batch, PB)[..., :HP * WP].reshape(
        NL, DEC_ROWS, batch, HP, WP)
    outs, ys = [], []
    for i, (h, w) in enumerate(SPATIAL):
        r = raw[i, :, :, 1:1 + h, 1:1 + w]                        # (NO, B, h, w)
        outs.append(jnp.transpose(r, (1, 0, 2, 3)))
        d = dec[i, :4 + NC, :, 1:1 + h, 1:1 + w]                  # (4+NC, B, h, w)
        ys.append(jnp.transpose(d, (1, 0, 2, 3)).reshape(batch, 4 + NC, h * w))
    y = jnp.concatenate(ys, axis=2)
    return y, outs
# TODO(synk): training-mode raw-only return, end2end/one2one (v10) path, and the
# export-format (tflite/edgetpu) grid-normalized decode / postprocess top-k are not
# part of the default inference path and are not implemented.


# ----------------------- pure-JAX reference (for checking) --------------------
def _ref_conv_bn_silu(x, p):
    y = jax.lax.conv_general_dilated(
        x, p["w"], (1, 1), "SAME", dimension_numbers=("NCHW", "OIHW", "NCHW"),
        precision=jax.lax.Precision.HIGHEST)
    scale = p["gamma"] / jnp.sqrt(p["var"] + BN_EPS)
    shift = p["beta"] - p["mean"] * scale
    y = y * scale[None, :, None, None] + shift[None, :, None, None]
    return y * jax.nn.sigmoid(y)


def _ref_branch(x, bp):
    y = _ref_conv_bn_silu(x, bp["c1"])
    y = _ref_conv_bn_silu(y, bp["c2"])
    y = jax.lax.conv_general_dilated(
        y, bp["c3"]["w"], (1, 1), "SAME", dimension_numbers=("NCHW", "OIHW", "NCHW"),
        precision=jax.lax.Precision.HIGHEST)
    return y + bp["c3"]["b"][None, :, None, None]


def _ref_contrastive(x, text, cv4):
    xn = x / jnp.maximum(jnp.sqrt(jnp.sum(x * x, axis=1, keepdims=True)), 1e-12)
    tn = text / jnp.maximum(jnp.sqrt(jnp.sum(text * text, axis=-1, keepdims=True)),
                            1e-12)
    out = jnp.einsum("bchw,bkc->bkhw", xn, tn, precision=jax.lax.Precision.HIGHEST)
    return out * jnp.exp(jnp.asarray(cv4["logit_scale"], jnp.float32)) + cv4["bias"]


def make_anchors(spatial, strides, offset=0.5):
    pts, strs = [], []
    for (h, w), s in zip(spatial, strides):
        sx = jnp.arange(w, dtype=jnp.float32) + offset
        sy = jnp.arange(h, dtype=jnp.float32) + offset
        syy, sxx = jnp.meshgrid(sy, sx, indexing="ij")
        pts.append(jnp.stack([sxx.reshape(-1), syy.reshape(-1)], axis=0))
        strs.append(jnp.full((1, h * w), s, jnp.float32))
    return jnp.concatenate(pts, axis=1), jnp.concatenate(strs, axis=1)


def world_detect_reference(xs, text, params):
    outs = []
    for i in range(NL):
        box = _ref_branch(xs[i], params["cv2"][i])
        emb = _ref_branch(xs[i], params["cv3"][i])
        cls = _ref_contrastive(emb, text, params["cv4"][i])
        outs.append(jnp.concatenate([box, cls], axis=1))
    b = xs[0].shape[0]
    x_cat = jnp.concatenate([o.reshape(b, NO, -1) for o in outs], axis=2)
    box, cls = x_cat[:, :4 * REG_MAX], x_cat[:, 4 * REG_MAX:]
    prob = jax.nn.softmax(box.reshape(b, 4, REG_MAX, -1), axis=2)
    dfl = jnp.sum(prob * jnp.arange(REG_MAX, dtype=jnp.float32)[None, None, :, None],
                  axis=2)                                          # (B, 4, A)
    anchors, stride_t = make_anchors(SPATIAL, STRIDES, 0.5)
    lt, rb = dfl[:, :2], dfl[:, 2:]
    x1y1 = anchors[None] - lt
    x2y2 = anchors[None] + rb
    dbox = jnp.concatenate([(x1y1 + x2y2) * 0.5, x2y2 - x1y1], axis=1) * stride_t[None]
    return jnp.concatenate([dbox, jax.nn.sigmoid(cls)], axis=1), outs


# --------------------------- parameter initialization -------------------------
def init_conv_bn(key, cin, cout):
    k1, k2, k3, k4, k5 = jax.random.split(key, 5)
    return dict(
        w=0.1 * jax.random.normal(k1, (cout, cin, 3, 3), jnp.float32),
        gamma=1.0 + 0.1 * jax.random.normal(k2, (cout,), jnp.float32),
        beta=0.1 * jax.random.normal(k3, (cout,), jnp.float32),
        mean=0.1 * jax.random.normal(k4, (cout,), jnp.float32),
        var=jnp.abs(jax.random.normal(k5, (cout,), jnp.float32)) + 0.5,
    )


def init_conv1x1(key, cin, cout):
    k1, k2 = jax.random.split(key)
    return dict(w=0.1 * jax.random.normal(k1, (cout, cin, 1, 1), jnp.float32),
                b=0.1 * jax.random.normal(k2, (cout,), jnp.float32))


def init_branch(key, cin, cmid, cout):
    k1, k2, k3 = jax.random.split(key, 3)
    return dict(c1=init_conv_bn(k1, cin, cmid),
                c2=init_conv_bn(k2, cmid, cmid),
                c3=init_conv1x1(k3, cmid, cout))


def init_params(key):
    ks = jax.random.split(key, 2 * NL)
    cv2 = [init_branch(ks[i], CH[i], C2, 4 * REG_MAX) for i in range(NL)]
    cv3 = [init_branch(ks[NL + i], CH[i], C3, EMBED) for i in range(NL)]
    # ContrastiveHead defaults: bias = -10.0, logit_scale = log(1/0.07)
    cv4 = [dict(bias=-10.0, logit_scale=math.log(1.0 / 0.07)) for _ in range(NL)]
    return dict(cv2=cv2, cv3=cv3, cv4=cv4)


# ----------------------------------- main --------------------------------------
if __name__ == "__main__":
    key = jax.random.PRNGKey(0)
    kx0, kx1, ktext, kparams = jax.random.split(key, 4)
    xs = [
        jax.random.normal(kx0, (BATCH, CH[0], SPATIAL[0][0], SPATIAL[0][1]), jnp.float32),
        jax.random.normal(kx1, (BATCH, CH[1], SPATIAL[1][0], SPATIAL[1][1]), jnp.float32),
    ]
    text = jax.random.normal(ktext, (BATCH, NC, EMBED), jnp.float32)
    params = init_params(kparams)

    roll_sign = _probe_roll_sign()

    fwd = jax.jit(world_detect_forward, static_argnames=("roll_sign",))
    y, outs = fwd(xs, text, params, roll_sign=roll_sign)
    jax.block_until_ready(y)
    for o in outs:
        jax.block_until_ready(o)

    total_anchors = sum(h * w for h, w in SPATIAL)
    assert y.shape == (BATCH, 4 + NC, total_anchors)
    assert all(o.shape == (BATCH, NO, h, w) for o, (h, w) in zip(outs, SPATIAL))
    assert bool(jnp.all(jnp.isfinite(y)))

    # numerical check against a pure-JAX reference of the PyTorch module
    y_ref, outs_ref = jax.jit(world_detect_reference)(xs, text, params)
    np.testing.assert_allclose(np.asarray(y), np.asarray(y_ref), rtol=2e-2, atol=2e-2)
    for o, orf in zip(outs, outs_ref):
        np.testing.assert_allclose(np.asarray(o), np.asarray(orf), rtol=2e-2, atol=2e-2)

    print("KERNEL_OK")
</pallas_src>

<mosaic_0001>
module attributes {stable_mosaic.version = 11 : i64} {
  func.func @k(%arg0: memref<8x128xf32, #tpu.memory_space<vmem>>, %arg1: memref<8x128xf32, #tpu.memory_space<vmem>>) attributes {dimension_semantics = [], scalar_prefetch = 0 : i64, scratch_operands = 0 : i64, tpu.core_type = #tpu.core_type<tc>} {
    %c0 = arith.constant 0 : index
    %c0_0 = arith.constant 0 : index
    %0 = vector.load %arg0[%c0, %c0_0] : memref<8x128xf32, #tpu.memory_space<vmem>>, vector<8x128xf32>
    %c1_i32 = arith.constant 1 : i32
    %1 = tpu.dynamic_rotate %0 by %c1_i32 dim 1 : vector<8x128xf32>, i32 -> vector<8x128xf32>
    %c0_1 = arith.constant 0 : index
    %c0_2 = arith.constant 0 : index
    %2 = vector.load %arg1[%c0_1, %c0_2] : memref<8x128xf32, #tpu.memory_space<vmem>>, vector<8x128xf32>
    tpu.vector_store %arg1[%c0_1, %c0_2], %1 {strides = array<i32>} : memref<8x128xf32, #tpu.memory_space<vmem>>, vector<8x128xf32>,
    return
  }
}

</mosaic_0001>

<bundles_post_ra>
// kernel: tpu_custom_call.1
= control target key start
LH: loop header
LB: loop body
LE: loop exit
PB: predicated region body
PF: predicated region fallthrough
CT: control target
= control target key end

     0   :  { %6 = vsyncpa [#allocation3], 0  ;;  %s128_s0 = inlined_call_operand.hbm [shape: f32[8,128], index: 0, kind: input, shape index: {}]   ;;  %s129_s1 = inlined_call_operand.hbm [shape: f32[8,128], index: 1, kind: output, shape index: {}]  }
   0x1   :  { %7 = vsyncpa [#allocation4], 0  ;;  %s91_s6 = smov [#allocation2]   ;;  %s43_s10 = scalar_lea.hbm %s128_s0, 128 }
   0x2   :  { %s14_s7 = sshll.u32 %s91_s6, 4  ;;  %p44_p0 = scmp.ne.s32.totalorder %s128_s0, %s43_s10  ;;  %s15_s7 = int_to_ptr.vmem [resolvable:$true] %s14_s7 }
   0x3   :  { %p47_p1 = scmp.lt.u32.totalorder %s43_s10, %s128_s0 }
   0x5   :  { %p49_p2 = pnand %p47_p1, %p44_p0 }
   0x7   :  { %52 = shalt.err (!%p49_p2)
}
   0x8   :  { %s53_s15 = scalar_lea.vmem %s15_s7, 128  ;;  %p58_p4 = scmp.lt.s32.totalorder %s15_s7, %s15_s7 }
   0x9   :  { %p54_p3 = scmp.ne.s32.totalorder %s15_s7, %s53_s15  ;;  %p59_p5 = scmp.lt.s32.totalorder %s53_s15, %s53_s15 }
   0xb   :  { %p60_p6 = por %p59_p5, %p58_p4 }
   0xd   :  { %p61_p7 = pnand %p60_p6, %p54_p3 }
   0xf   :  { %64 = shalt.err (!%p61_p7)
}
  0x10   :  { %17 = dma.hbm_to_vmem [thread:$0]  %s128_s0, 128, %s15_s7, [#allocation3]  }
  0x11   :  { %87 = dma.done.wait [#allocation3], 128  }
  0x12   :  { %88 = vsyncadd [#allocation3], 4294967168  ;;  %v21_v0 = vld [vmem:[#allocation2] sm:$0xff]  ;;  %s92_s18 = smov 1   ;;  %s93_s19 = smov [#allocation5]  }
  0x13   :  { %22 = vrot.lane.b32.xlu0 %v21_v0, %s92_s18  ;;  %s31_s20 = sshll.u32 %s93_s19, 4  ;;  %s32_s20 = int_to_ptr.vmem [resolvable:$true] %s31_s20 }
  0x14   :  { %s65_s21 = scalar_lea.vmem %s32_s20, 128  ;;  %p70_p9 = scmp.lt.s32.totalorder %s32_s20, %s32_s20 }
  0x15   :  { %p66_p8 = scmp.ne.s32.totalorder %s32_s20, %s65_s21  ;;  %p71_p10 = scmp.lt.s32.totalorder %s65_s21, %s65_s21 }
  0x17   :  { %p72_p11 = por %p71_p10, %p70_p9 }
  0x19   :  { %p73_p12 = pnand %p72_p11, %p66_p8 }
  0x85   :  { %v23_v1 = vpop.permute.xlu0 %22 }
  0x86   :  { %24 = vst [vmem:[#allocation5] sm:$0xff] %v23_v1 }
  0x87   :  { %76 = shalt.err (!%p73_p12)
}
  0x88   :  { %s77_s0 = scalar_lea.hbm %s129_s1, 128 }
  0x89   :  { %p78_p13 = scmp.ne.s32.totalorder %s129_s1, %s77_s0  ;;  %p81_p0 = scmp.lt.u32.totalorder %s77_s0, %s129_s1 }
  0x8b   :  { %p83_p1 = pnand %p81_p0, %p78_p13 }
  0x8d   :  { %86 = shalt.err (!%p83_p1)
}
  0x8e   :  { %34 = dma.vmem_to_hbm [thread:$0]  %s32_s20, 128, %s129_s1, [#allocation4]  }
  0x8f   :  { %89 = dma.done.wait [#allocation4], 128  }
  0x90   :  { %90 = vsyncadd [#allocation4], 4294967168 }
  0x91   :  { %38 = vsyncpa [#allocation3], 1 }
  0x92   :  { %39 = vsyncpa [#allocation4], 1 }

</bundles_post_ra>
